<compile_context>
chip_gen: v5e
topology: v5e:2x2
jax: 0.10.0
libtpu: 0.0.40
codegen_flags: <defaults>
</compile_context>

<pallas_src>
import math

import jax
import jax.numpy as jnp
from jax.experimental import pallas as pl
from jax.experimental.pallas import tpu as pltpu

# ---- test-time model hyper-parameters (ResBlock(in_channels, hiddensize)) ----
BATCH = 256
IN_CH = 128
HIDDEN = 256
BLOCK_B = 256      # batch tile: one step on v5e/v6e at B=256; use 128 on v7x
HID_CHUNK = 128    # hidden-dim chunk fed through matmul1 -> tanh -> matmul2


def resblock_kernel(x_ref, w1_ref, b1_ref, w2_ref, b2_ref, o_ref):
    """Fused ResBlock forward for one batch tile.

    x_ref : (TB, C)  f32
    w1_ref: (C, H)   bf16     b1_ref: (1, H)  f32
    w2_ref: (H, C)   bf16     b2_ref: (1, C)  f32
    o_ref : (TB, C)  f32
    """
    H = w1_ref.shape[1]
    chunk = HID_CHUNK if H % HID_CHUNK == 0 else H
    n_chunks = H // chunk

    x_f32 = x_ref[...].astype(jnp.float32)
    x_bf = x_ref[...].astype(jnp.bfloat16)          # MXU LHS (hoisted, reused)

    # Seed the f32 accumulator with the residual + second bias.
    acc = x_f32 + b2_ref[...]

    # Static unroll over hidden chunks: keeps h narrow (TB x 128, bf16) and lets
    # the EUP tanh of chunk c overlap the MXU work of the neighbouring chunk.
    for c in range(n_chunks):
        sl = pl.ds(c * chunk, chunk)
        pre = jnp.dot(x_bf, w1_ref[:, sl],
                      preferred_element_type=jnp.float32) + b1_ref[:, sl]
        h_c = jnp.tanh(pre).astype(jnp.bfloat16)
        acc = acc + jnp.dot(h_c, w2_ref[sl, :],
                            preferred_element_type=jnp.float32)

    o_ref[...] = jnp.tanh(acc).astype(o_ref.dtype)


def resblock_forward(x, w1, b1, w2, b2, *, block_b=BLOCK_B):
    """Pallas-call wrapper: batch-tiled grid, weights resident in VMEM as bf16."""
    B, C = x.shape
    H = w1.shape[1]

    # bf16 MXU operands (halves weight DMA bytes); biases stay f32 for the
    # f32 epilogue.
    w1_bf = w1.astype(jnp.bfloat16)
    w2_bf = w2.astype(jnp.bfloat16)

    if block_b >= B:
        # One tile covering the whole batch: block == full dim is always legal,
        # and a single grid step avoids per-step overhead on single-TC chips.
        block_b = B
        pad = 0
    else:
        assert block_b % 8 == 0, "batch tile must be 8-row aligned"
        # Edge blocks are write-masked by Pallas (op is row-wise), so no padding
        # is needed unless B itself breaks sublane (multiple-of-8) alignment.
        pad = (-B) % 8

    xp = jnp.pad(x, ((0, pad), (0, 0))) if pad else x
    Bp = B + pad
    grid = (pl.cdiv(Bp, block_b),)

    cost = pl.CostEstimate(
        flops=4 * B * C * H,                       # two (B,C)x(C,H)-shaped matmuls
        transcendentals=B * (H + C),               # two tanh layers
        bytes_accessed=(x.size * 4 + B * C * 4     # x in, out
                        + w1_bf.size * 2 + w2_bf.size * 2
                        + b1.size * 4 + b2.size * 4),
    )

    out = pl.pallas_call(
        resblock_kernel,
        out_shape=jax.ShapeDtypeStruct((Bp, C), x.dtype),
        grid=grid,
        in_specs=[
            pl.BlockSpec((block_b, C), lambda i: (i, 0)),  # x: tiled on batch
            pl.BlockSpec((C, H), lambda i: (0, 0)),        # w1 (bf16): resident
            pl.BlockSpec((1, H), lambda i: (0, 0)),        # b1: resident
            pl.BlockSpec((H, C), lambda i: (0, 0)),        # w2 (bf16): resident
            pl.BlockSpec((1, C), lambda i: (0, 0)),        # b2: resident
        ],
        out_specs=pl.BlockSpec((block_b, C), lambda i: (i, 0)),
        compiler_params=pltpu.CompilerParams(
            dimension_semantics=("parallel",)),
        cost_estimate=cost,
    )(xp, w1_bf, b1, w2_bf, b2)
    return out[:B] if pad else out


forward = jax.jit(resblock_forward, static_argnames=("block_b",))


def init_linear(key, fan_in, fan_out):
    """PyTorch-style nn.Linear init; weight returned as (in, out)."""
    k = 1.0 / math.sqrt(fan_in)
    kw, kb = jax.random.split(key)
    w = jax.random.uniform(kw, (fan_in, fan_out), jnp.float32, -k, k)
    b = jax.random.uniform(kb, (1, fan_out), jnp.float32, -k, k)
    return w, b


def make_params(key):
    k1, k2 = jax.random.split(key)
    w1, b1 = init_linear(k1, IN_CH, HIDDEN)   # nn.Linear(in_channels, hiddensize)
    w2, b2 = init_linear(k2, HIDDEN, IN_CH)   # nn.Linear(hiddensize, in_channels)
    return w1, b1, w2, b2


def resblock_reference(x, w1, b1, w2, b2):
    """Pure-JAX f32 reference mirroring the PyTorch forward."""
    h = jnp.tanh(x @ w1 + b1)
    return jnp.tanh(h @ w2 + b2 + x)


if __name__ == "__main__":
    key = jax.random.PRNGKey(0)
    k_x, k_p = jax.random.split(key)
    x = jax.random.normal(k_x, (BATCH, IN_CH), jnp.float32)
    params = make_params(k_p)
    ref = resblock_reference(x, *params)

    # Single-tile path (one grid step, recommended for v5e/v6e at this size).
    out = forward(x, *params)
    jax.block_until_ready(out)
    assert out.shape == (BATCH, IN_CH)
    err = float(jnp.max(jnp.abs(out - ref)))
    # bf16 MXU inputs with f32 accumulation => relaxed tolerance.
    assert jnp.allclose(out, ref, atol=2e-2, rtol=2e-2), f"max abs err {err}"

    # Multi-step path (block_b=128 -> 2 grid steps; the v7x-friendly tiling).
    out2 = forward(x, *params, block_b=128)
    jax.block_until_ready(out2)
    err2 = float(jnp.max(jnp.abs(out2 - ref)))
    assert jnp.allclose(out2, ref, atol=2e-2, rtol=2e-2), f"max abs err {err2}"

    print("KERNEL_OK")
</pallas_src>

<mosaic_0001>
module attributes {stable_mosaic.version = 11 : i64} {
  func.func @resblock_kernel(%arg0: i32, %arg1: memref<256x128xf32, #tpu.memory_space<vmem>>, %arg2: memref<128x256xbf16, #tpu.memory_space<vmem>>, %arg3: memref<1x256xf32, #tpu.memory_space<vmem>>, %arg4: memref<256x128xbf16, #tpu.memory_space<vmem>>, %arg5: memref<1x128xf32, #tpu.memory_space<vmem>>, %arg6: memref<256x128xf32, #tpu.memory_space<vmem>>) attributes {dimension_semantics = [#tpu.dimension_semantics<parallel>], iteration_bounds = array<i64: 1>, scalar_prefetch = 0 : i64, scratch_operands = 0 : i64, tpu.core_type = #tpu.core_type<tc>, window_params = [{transform_indices = @transform_0, window_bounds = array<i64: 256, 128>}, {pipeline_mode = #tpu.pipeline_mode<synchronous>, transform_indices = @transform_1, window_bounds = array<i64: 128, 256>}, {pipeline_mode = #tpu.pipeline_mode<synchronous>, transform_indices = @transform_2, window_bounds = array<i64: 1, 256>}, {pipeline_mode = #tpu.pipeline_mode<synchronous>, transform_indices = @transform_3, window_bounds = array<i64: 256, 128>}, {pipeline_mode = #tpu.pipeline_mode<synchronous>, transform_indices = @transform_4, window_bounds = array<i64: 1, 128>}, {transform_indices = @transform_5, window_bounds = array<i64: 256, 128>}]} {
    %c0 = arith.constant 0 : index
    %c0_0 = arith.constant 0 : index
    %0 = vector.load %arg1[%c0, %c0_0] : memref<256x128xf32, #tpu.memory_space<vmem>>, vector<256x128xf32>
    %c0_1 = arith.constant 0 : index
    %c0_2 = arith.constant 0 : index
    %1 = vector.load %arg1[%c0_1, %c0_2] : memref<256x128xf32, #tpu.memory_space<vmem>>, vector<256x128xf32>
    %2 = arith.truncf %1 : vector<256x128xf32> to vector<256x128xbf16>
    %c0_3 = arith.constant 0 : index
    %c0_4 = arith.constant 0 : index
    %3 = vector.load %arg5[%c0_3, %c0_4] : memref<1x128xf32, #tpu.memory_space<vmem>>, vector<1x128xf32>
    %4 = vector.broadcast %3 : vector<1x128xf32> to vector<256x128xf32>
    %5 = arith.addf %0, %4 : vector<256x128xf32>
    %c0_5 = arith.constant 0 : index
    %c0_6 = arith.constant 0 : index
    %6 = vector.load %arg2[%c0_5, %c0_6] : memref<128x256xbf16, #tpu.memory_space<vmem>>, vector<128x128xbf16>
    %cst = arith.constant dense<0.000000e+00> : vector<256x128xf32>
    %7 = tpu.matmul %2, %6, %cst {dimension_numbers = #tpu.dot_dimension_numbers<[1], [0], [0], [1], [0, 0, 1, 1], [], []>} : vector<256x128xbf16>, vector<128x128xbf16>, vector<256x128xf32> -> vector<256x128xf32>
    %c0_7 = arith.constant 0 : index
    %c0_8 = arith.constant 0 : index
    %8 = vector.load %arg3[%c0_7, %c0_8] : memref<1x256xf32, #tpu.memory_space<vmem>>, vector<1x128xf32>
    %9 = vector.broadcast %8 : vector<1x128xf32> to vector<256x128xf32>
    %10 = arith.addf %7, %9 : vector<256x128xf32>
    %11 = math.tanh %10 : vector<256x128xf32>
    %12 = arith.truncf %11 : vector<256x128xf32> to vector<256x128xbf16>
    %c0_9 = arith.constant 0 : index
    %c0_10 = arith.constant 0 : index
    %13 = vector.load %arg4[%c0_9, %c0_10] : memref<256x128xbf16, #tpu.memory_space<vmem>>, vector<128x128xbf16>
    %cst_11 = arith.constant dense<0.000000e+00> : vector<256x128xf32>
    %14 = tpu.matmul %12, %13, %cst_11 {dimension_numbers = #tpu.dot_dimension_numbers<[1], [0], [0], [1], [0, 0, 1, 1], [], []>} : vector<256x128xbf16>, vector<128x128xbf16>, vector<256x128xf32> -> vector<256x128xf32>
    %15 = arith.addf %5, %14 : vector<256x128xf32>
    %c0_12 = arith.constant 0 : index
    %c128 = arith.constant 128 : index
    %16 = vector.load %arg2[%c0_12, %c128] : memref<128x256xbf16, #tpu.memory_space<vmem>>, vector<128x128xbf16>
    %cst_13 = arith.constant dense<0.000000e+00> : vector<256x128xf32>
    %17 = tpu.matmul %2, %16, %cst_13 {dimension_numbers = #tpu.dot_dimension_numbers<[1], [0], [0], [1], [0, 0, 1, 1], [], []>} : vector<256x128xbf16>, vector<128x128xbf16>, vector<256x128xf32> -> vector<256x128xf32>
    %c0_14 = arith.constant 0 : index
    %c128_15 = arith.constant 128 : index
    %18 = vector.load %arg3[%c0_14, %c128_15] : memref<1x256xf32, #tpu.memory_space<vmem>>, vector<1x128xf32>
    %19 = vector.broadcast %18 : vector<1x128xf32> to vector<256x128xf32>
    %20 = arith.addf %17, %19 : vector<256x128xf32>
    %21 = math.tanh %20 : vector<256x128xf32>
    %22 = arith.truncf %21 : vector<256x128xf32> to vector<256x128xbf16>
    %c128_16 = arith.constant 128 : index
    %c0_17 = arith.constant 0 : index
    %23 = vector.load %arg4[%c128_16, %c0_17] : memref<256x128xbf16, #tpu.memory_space<vmem>>, vector<128x128xbf16>
    %cst_18 = arith.constant dense<0.000000e+00> : vector<256x128xf32>
    %24 = tpu.matmul %22, %23, %cst_18 {dimension_numbers = #tpu.dot_dimension_numbers<[1], [0], [0], [1], [0, 0, 1, 1], [], []>} : vector<256x128xbf16>, vector<128x128xbf16>, vector<256x128xf32> -> vector<256x128xf32>
    %25 = arith.addf %15, %24 : vector<256x128xf32>
    %26 = math.tanh %25 : vector<256x128xf32>
    %c0_19 = arith.constant 0 : index
    %c0_20 = arith.constant 0 : index
    %27 = vector.load %arg6[%c0_19, %c0_20] : memref<256x128xf32, #tpu.memory_space<vmem>>, vector<256x128xf32>
    tpu.vector_store %arg6[%c0_19, %c0_20], %26 {strides = array<i32>} : memref<256x128xf32, #tpu.memory_space<vmem>>, vector<256x128xf32>,
    return
  }
  func.func @transform_0(%arg0: i32) -> (i32, i32) {
    %c0_i32 = arith.constant 0 : i32
    %c0_i32_0 = arith.constant 0 : i32
    return %arg0, %c0_i32 : i32, i32
  }
  func.func @transform_1(%arg0: i32) -> (i32, i32) {
    %c0_i32 = arith.constant 0 : i32
    %c0_i32_0 = arith.constant 0 : i32
    %c0_i32_1 = arith.constant 0 : i32
    return %c0_i32, %c0_i32_0 : i32, i32
  }
  func.func @transform_2(%arg0: i32) -> (i32, i32) {
    %c0_i32 = arith.constant 0 : i32
    %c0_i32_0 = arith.constant 0 : i32
    %c0_i32_1 = arith.constant 0 : i32
    return %c0_i32, %c0_i32_0 : i32, i32
  }
  func.func @transform_3(%arg0: i32) -> (i32, i32) {
    %c0_i32 = arith.constant 0 : i32
    %c0_i32_0 = arith.constant 0 : i32
    %c0_i32_1 = arith.constant 0 : i32
    return %c0_i32, %c0_i32_0 : i32, i32
  }
  func.func @transform_4(%arg0: i32) -> (i32, i32) {
    %c0_i32 = arith.constant 0 : i32
    %c0_i32_0 = arith.constant 0 : i32
    %c0_i32_1 = arith.constant 0 : i32
    return %c0_i32, %c0_i32_0 : i32, i32
  }
  func.func @transform_5(%arg0: i32) -> (i32, i32) {
    %c0_i32 = arith.constant 0 : i32
    %c0_i32_0 = arith.constant 0 : i32
    return %arg0, %c0_i32 : i32, i32
  }
}

</mosaic_0001>

<bundles_post_ra>
// kernel: resblock_forward.1
= control target key start
LH: loop header
LB: loop body
LE: loop exit
PB: predicated region body
PF: predicated region fallthrough
CT: control target
= control target key end

     0   :  { %s1866_s0 = inlined_call_operand.vmem [shape: f32[256,128], index: 0, kind: input, shape index: {}]   ;;  %s1867_s1 = inlined_call_operand.vmem [shape: bf16[128,256], index: 1, kind: input, shape index: {}]   ;;  %s1868_s2 = inlined_call_operand.vmem [shape: f32[1,256], index: 2, kind: input, shape index: {}]   ;;  %s1869_s3 = inlined_call_operand.vmem [shape: bf16[256,128], index: 3, kind: input, shape index: {}]   ;;  %s1870_s4 = inlined_call_operand.vmem [shape: f32[1,128], index: 4, kind: input, shape index: {}]   ;;  %s1871_s5 = inlined_call_operand.hbm [shape: f32[256,128], index: 5, kind: output, shape index: {}]  }
   0x1   :  { %v997_v0 = vld [vmem:[%s1867_s1 + $0x70] sm:$0xf]  ;;  %v1102_v1 = vld [vmem:[%s1867_s1 + $0x74] sm:$0xf0]  ;;  %v1061_v2 = vld [vmem:[%s1867_s1 + $0x74] sm:$0xf] }
   0x2   :  { %v998_v3 = vor.u32 %v1102_v1, %v997_v0  ;;  %v1118_v4 = vld [vmem:[%s1867_s1 + $0x78] sm:$0xf0]  ;;  %v993_v5 = vld [vmem:[%s1867_s1 + $0x60] sm:$0xf]  ;;  %v1101_v6 = vld [vmem:[%s1867_s1 + $0x64] sm:$0xf0] }
   0x3   :  { %v1062_v7 = vor.u32 %v1118_v4, %v1061_v2  ;;  %v1057_v8 = vld [vmem:[%s1867_s1 + $0x64] sm:$0xf]  ;;  %v1117_v9 = vld [vmem:[%s1867_s1 + $0x68] sm:$0xf0]  ;;  %v994_v10 = vor.u32 %v1101_v6, %v993_v5  ;;  %v989_v12 = vld [vmem:[%s1867_s1 + $0x50] sm:$0xf] }
   0x4   :  { %173 = vmatpush.bf16.msra.mxu0 %v998_v3  ;;  %v1058_v11 = vor.u32 %v1117_v9, %v1057_v8  ;;  %v1100_v13 = vld [vmem:[%s1867_s1 + $0x54] sm:$0xf0]  ;;  %v1053_v14 = vld [vmem:[%s1867_s1 + $0x54] sm:$0xf]  ;;  %v1116_v15 = vld [vmem:[%s1867_s1 + $0x58] sm:$0xf0] }
   0x5   :  { %563 = vmatpush.bf16.msra.mxu2 %v1062_v7  ;;  %v990_v16 = vor.u32 %v1100_v13, %v989_v12  ;;  %v1054_v17 = vor.u32 %v1116_v15, %v1053_v14  ;;  %v985_v18 = vld [vmem:[%s1867_s1 + $0x40] sm:$0xf]  ;;  %v1099_v19 = vld [vmem:[%s1867_s1 + $0x44] sm:$0xf0]  ;;  %v1049_v20 = vld [vmem:[%s1867_s1 + $0x44] sm:$0xf] }
   0x6   :  { %v1115_v21 = vld [vmem:[%s1867_s1 + $0x48] sm:$0xf0]  ;;  %v986_v22 = vor.u32 %v1099_v19, %v985_v18  ;;  %v981_v23 = vld [vmem:[%s1867_s1 + $0x30] sm:$0xf]  ;;  %v1098_v25 = vld [vmem:[%s1867_s1 + $0x34] sm:$0xf0] }
   0x7   :  { %v1050_v24 = vor.u32 %v1115_v21, %v1049_v20  ;;  %v1045_v26 = vld [vmem:[%s1867_s1 + $0x34] sm:$0xf]  ;;  %v1114_v27 = vld [vmem:[%s1867_s1 + $0x38] sm:$0xf0] }
   0x8   :  { %174 = vmatpush.bf16.msra.mxu0 %v994_v10 }
   0x9   :  { %564 = vmatpush.bf16.msra.mxu2 %v1058_v11 }
   0xc   :  { %175 = vmatpush.bf16.msra.mxu0 %v990_v16 }
   0xd   :  { %565 = vmatpush.bf16.msra.mxu2 %v1054_v17 }
   0xe   :  { %10 = vsyncpa [#allocation3], 0  ;;  %v982_v28 = vor.u32 %v1098_v25, %v981_v23  ;;  %v1046_v29 = vor.u32 %v1114_v27, %v1045_v26  ;;  %v977_v30 = vld [vmem:[%s1867_s1 + $0x20] sm:$0xf]  ;;  %v1097_v31 = vld [vmem:[%s1867_s1 + $0x24] sm:$0xf0] }
   0xf   :  { %v1041_v32 = vld [vmem:[%s1867_s1 + $0x24] sm:$0xf]  ;;  %v1113_v33 = vld [vmem:[%s1867_s1 + $0x28] sm:$0xf0]  ;;  %v978_v34 = vor.u32 %v1097_v31, %v977_v30  ;;  %v973_v36 = vld [vmem:[%s1867_s1 + $0x10] sm:$0xf] }
  0x10   :  { %176 = vmatpush.bf16.msra.mxu0 %v986_v22  ;;  %v1042_v35 = vor.u32 %v1113_v33, %v1041_v32  ;;  %v1096_v37 = vld [vmem:[%s1867_s1 + $0x14] sm:$0xf0]  ;;  %v1037_v38 = vld [vmem:[%s1867_s1 + $0x14] sm:$0xf]  ;;  %v1112_v39 = vld [vmem:[%s1867_s1 + $0x18] sm:$0xf0] }
  0x11   :  { %566 = vmatpush.bf16.msra.mxu2 %v1050_v24  ;;  %v974_v40 = vor.u32 %v1096_v37, %v973_v36  ;;  %v1038_v41 = vor.u32 %v1112_v39, %v1037_v38  ;;  %v969_v42 = vld [vmem:[%s1867_s1] sm:$0xf]  ;;  %v1095_v43 = vld [vmem:[%s1867_s1 + $0x4] sm:$0xf0]  ;;  %v1033_v44 = vld [vmem:[%s1867_s1 + $0x4] sm:$0xf] }
  0x12   :  { %v1111_v45 = vld [vmem:[%s1867_s1 + $0x8] sm:$0xf0]  ;;  %v970_v46 = vor.u32 %v1095_v43, %v969_v42  ;;  %v1483_v47 = vld [vmem:[%s1866_s0] sm:$0xff]  ;;  %v1495_v51 = vld [vmem:[%s1866_s0 + $0x10] sm:$0xff]  ;;  %s1352_s29 = smov 128   ;;  %s1353_s30 = smov 8  }
  0x13   :  { %v1488_v48 = vld [vmem:[%s1866_s0 + $0x8] sm:$0xff]  ;;  %v1034_v49 = vor.u32 %v1111_v45, %v1033_v44  ;;  %v1500_v52 = vld [vmem:[%s1866_s0 + $0x18] sm:$0xff]  ;;  %v1507_v54 = vld [vmem:[%s1866_s0 + $0x20] sm:$0xff] }
  0x14   :  { %177 = vmatpush.bf16.msra.mxu0 %v982_v28  ;;  %v53_v50 = vpack.c.bf16 %v1488_v48, %v1483_v47  ;;  %v54_v53 = vpack.c.bf16 %v1500_v52, %v1495_v51  ;;  %v1512_v55 = vld [vmem:[%s1866_s0 + $0x28] sm:$0xff]  ;;  %v1519_v57 = vld [vmem:[%s1866_s0 + $0x30] sm:$0xff]  ;;  %v1524_v58 = vld [vmem:[%s1866_s0 + $0x38] sm:$0xff] }
  0x15   :  { %567 = vmatpush.bf16.msra.mxu2 %v1046_v29  ;;  %v55_v56 = vpack.c.bf16 %v1512_v55, %v1507_v54  ;;  %v56_v59 = vpack.c.bf16 %v1524_v58, %v1519_v57  ;;  %v1531_v60 = vld [vmem:[%s1866_s0 + $0x40] sm:$0xff]  ;;  %v1536_v61 = vld [vmem:[%s1866_s0 + $0x48] sm:$0xff]  ;;  %v1543_v63 = vld [vmem:[%s1866_s0 + $0x50] sm:$0xff] }
  0x16   :  { %v57_v62 = vpack.c.bf16 %v1536_v61, %v1531_v60  ;;  %v1548_v0 = vld [vmem:[%s1866_s0 + $0x58] sm:$0xff]  ;;  %v1109_v4 = vld [vmem:[%s1869_s3 + $0x30] sm:$0xff]  ;;  %v1108_v6 = vld [vmem:[%s1869_s3 + $0x28] sm:$0xff] }
  0x17   :  { %v58_v1 = vpack.c.bf16 %v1548_v0, %v1543_v63  ;;  %v1110_v2 = vld [vmem:[%s1869_s3 + $0x38] sm:$0xff]  ;;  %v1125_v5 = vld [vmem:[%s1869_s3 + $0x70] sm:$0xff]  ;;  %v1570_v7 = vld [vmem:[%s1866_s0 + $0x60] sm:$0xff] }
  0x18   :  { %178 = vmatpush.bf16.msra.mxu0 %v978_v34  ;;  %v1126_v3 = vld [vmem:[%s1869_s3 + $0x78] sm:$0xff]  ;;  %374 = vmatpush.bf16.msra.mxu1 %v1110_v2  ;;  %v1575_v8 = vld [vmem:[%s1866_s0 + $0x68] sm:$0xff]  ;;  %v1107_v10 = vld [vmem:[%s1869_s3 + $0x20] sm:$0xff] }
  0x19   :  { %568 = vmatpush.bf16.msra.mxu2 %v1042_v35  ;;  %764 = vmatpush.bf16.msra.mxu3 %v1126_v3  ;;  %v59_v9 = vpack.c.bf16 %v1575_v8, %v1570_v7  ;;  %v1124_v11 = vld [vmem:[%s1869_s3 + $0x68] sm:$0xff]  ;;  %v1106_v12 = vld [vmem:[%s1869_s3 + $0x18] sm:$0xff]  ;;  %v1123_v13 = vld [vmem:[%s1869_s3 + $0x60] sm:$0xff] }
  0x1a   :  { %v1105_v14 = vld [vmem:[%s1869_s3 + $0x10] sm:$0xff]  ;;  %v1122_v15 = vld [vmem:[%s1869_s3 + $0x58] sm:$0xff]  ;;  %v1104_v16 = vld [vmem:[%s1869_s3 + $0x8] sm:$0xff] }
  0x1b   :  { %v1603_v17 = vld [vmem:[%s1866_s0 + $0x70] sm:$0xff]  ;;  %v1608_v18 = vld [vmem:[%s1866_s0 + $0x78] sm:$0xff]  ;;  %v1103_v21 = vld [vmem:[%s1869_s3] sm:$0xff] }
  0x1c   :  { %179 = vmatpush.bf16.msra.mxu0 %v974_v40  ;;  %375 = vmatpush.bf16.msra.mxu1 %v1109_v4  ;;  %v1121_v19 = vld [vmem:[%s1869_s3 + $0x50] sm:$0xff]  ;;  %v60_v20 = vpack.c.bf16 %v1608_v18, %v1603_v17  ;;  %v1120_v22 = vld [vmem:[%s1869_s3 + $0x48] sm:$0xff]  ;;  %v1119_v23 = vld [vmem:[%s1869_s3 + $0x40] sm:$0xff] }
  0x1d   :  { %569 = vmatpush.bf16.msra.mxu2 %v1038_v41  ;;  %765 = vmatpush.bf16.msra.mxu3 %v1125_v5  ;;  %v1627_v24 = vld [vmem:[%s1866_s0 + $0x80] sm:$0xff]  ;;  %v1632_v25 = vld [vmem:[%s1866_s0 + $0x88] sm:$0xff]  ;;  %v1651_v34 = vld [vmem:[%s1866_s0 + $0x90] sm:$0xff] }
  0x1e   :  { %v61_v26 = vpack.c.bf16 %v1632_v25, %v1627_v24  ;;  %v1639_v28 = vld [vmem:[%s1868_s2] ss:$0 sm:$0xff]  ;;  %v1645_v32 = vld [vmem:[%s1868_s2 + $0x1] ss:$0 sm:$0xff]  ;;  %v1656_v35 = vld [vmem:[%s1866_s0 + $0x98] sm:$0xff]  ;;  %s955_s2 = sshll.u32 %s1871_s5, 4  ;;  %s956_s2 = int_to_ptr.hbm [resolvable:$true] %s955_s2 }
  0x1f   :  { %v62_v39 = vpack.c.bf16 %v1656_v35, %v1651_v34 }
  0x20   :  { %180 = vmatpush.bf16.msra.mxu0 %v970_v46  ;;  %376 = vmatpush.bf16.msra.mxu1 %v1108_v6 }
  0x21   :  { %570 = vmatpush.bf16.msra.mxu2 %v1034_v49  ;;  %766 = vmatpush.bf16.msra.mxu3 %v1124_v11 }
  0x23   :  { %181 = vmatmul.bf16.vlgmr.msra.gmra.mxu0 %v53_v50 }
  0x24   :  { %571 = vmatmul.bf16.vlgmr.msra.gmra.mxu2 %v53_v50  ;;  %377 = vmatpush.bf16.msra.mxu1 %v1107_v10 }
  0x25   :  { %767 = vmatpush.bf16.msra.mxu3 %v1123_v13 }
  0x28   :  { %378 = vmatpush.bf16.msra.mxu1 %v1106_v12 }
  0x29   :  { %768 = vmatpush.bf16.msra.mxu3 %v1122_v15 }
  0x2c   :  { %379 = vmatpush.bf16.msra.mxu1 %v1105_v14 }
  0x2d   :  { %769 = vmatpush.bf16.msra.mxu3 %v1121_v19 }
  0x30   :  { %380 = vmatpush.bf16.msra.mxu1 %v1104_v16 }
  0x31   :  { %770 = vmatpush.bf16.msra.mxu3 %v1120_v22 }
  0x33   :  { %186 = vmatmul.bf16.gmra.mxu0 %v54_v53 }
  0x34   :  { %576 = vmatmul.bf16.gmra.mxu2 %v54_v53  ;;  %381 = vmatpush.bf16.msra.mxu1 %v1103_v21  ;;  %v1688_v21 = vld [vmem:[%s1866_s0 + $0xb8] sm:$0xff] }
  0x35   :  { %771 = vmatpush.bf16.msra.mxu3 %v1119_v23 }
  0x43   :  { %191 = vmatmul.bf16.gmra.mxu0 %v55_v56 }
  0x44   :  { %581 = vmatmul.bf16.gmra.mxu2 %v55_v56 }
  0x53   :  { %196 = vmatmul.bf16.gmra.mxu0 %v56_v59 }
  0x54   :  { %586 = vmatmul.bf16.gmra.mxu2 %v56_v59  ;;  %v1667_v59 = vld [vmem:[%s1866_s0 + $0xa0] sm:$0xff] }
  0x63   :  { %201 = vmatmul.bf16.gmra.mxu0 %v57_v62 }
  0x64   :  { %591 = vmatmul.bf16.gmra.mxu2 %v57_v62  ;;  %v1672_v62 = vld [vmem:[%s1866_s0 + $0xa8] sm:$0xff] }
  0x65   :  { %v63_v4 = vpack.c.bf16 %v1672_v62, %v1667_v59 }
  0x73   :  { %206 = vmatmul.bf16.gmra.mxu0 %v58_v1 }
  0x74   :  { %596 = vmatmul.bf16.gmra.mxu2 %v58_v1 }
  0x83   :  { %211 = vmatmul.bf16.gmra.mxu0 %v59_v9 }
  0x84   :  { %601 = vmatmul.bf16.gmra.mxu2 %v59_v9 }
  0x93   :  { %216 = vmatmul.bf16.gmra.mxu0 %v60_v20 }
  0x94   :  { %606 = vmatmul.bf16.gmra.mxu2 %v60_v20  ;;  %v1683_v20 = vld [vmem:[%s1866_s0 + $0xb0] sm:$0xff] }
  0xa0   :  { %v182_v27 = vpop.f32.mrf.mxu0 }
  0xa1   :  { %v183_v29 = vadd.f32 %v1639_v28, %v182_v27  ;;  %v64_v27 = vpack.c.bf16 %v1688_v21, %v1683_v20 }
  0xa3   :  { %221 = vmatmul.bf16.gmra.mxu0 %v61_v26  ;;  %1133 = vtanh.f32 %v183_v29 }
  0xa4   :  { %611 = vmatmul.bf16.gmra.mxu2 %v61_v26 }
  0xa7   :  { %v572_v30 = vpop.f32.mrf.mxu2 }
  0xa8   :  { %v184_v31 = vpop.f32.mrf.mxu0  ;;  %v573_v36 = vadd.f32 %v1645_v32, %v572_v30 }
  0xa9   :  { %v185_v33 = vadd.f32 %v1639_v28, %v184_v31  ;;  %v1134_v37 = vpop.eup %1133 }
  0xab   :  { %1135 = vtanh.f32 %v185_v33 }
  0xac   :  { %1137 = vtanh.f32 %v573_v36 }
  0xaf   :  { %v574_v38 = vpop.f32.mrf.mxu2 }
  0xb0   :  { %v575_v40 = vadd.f32 %v1645_v32, %v574_v38  ;;  %v187_v41 = vpop.f32.mrf.mxu0 }
  0xb1   :  { %v1136_v42 = vpop.eup %1135  ;;  %v188_v44 = vadd.f32 %v1639_v28, %v187_v41 }
  0xb2   :  { %1139 = vtanh.f32 %v575_v40  ;;  %v294_v43 = vpack.c.bf16 %v1136_v42, %v1134_v37  ;;  %v1138_v45 = vpop.eup %1137 }
  0xb3   :  { %226 = vmatmul.bf16.gmra.mxu0 %v62_v39  ;;  %1141 = vtanh.f32 %v188_v44  ;;  %v1704_v44 = vld [vmem:[%s1866_s0 + $0xc8] sm:$0xff] }
  0xb4   :  { %616 = vmatmul.bf16.gmra.mxu2 %v62_v39  ;;  %382 = vmatmul.bf16.vlgmr.msra.gmra.mxu1 %v294_v43  ;;  %v1699_v43 = vld [vmem:[%s1866_s0 + $0xc0] sm:$0xff] }
  0xb7   :  { %v577_v46 = vpop.f32.mrf.mxu2 }
  0xb8   :  { %v1140_v49 = vpop.eup %1139  ;;  %v189_v50 = vpop.f32.mrf.mxu0  ;;  %v578_v1 = vadd.f32 %v1645_v32, %v577_v46 }
  0xb9   :  { %v190_v53 = vadd.f32 %v1639_v28, %v189_v50  ;;  %v684_v56 = vpack.c.bf16 %v1140_v49, %v1138_v45  ;;  %v1142_v2 = vpop.eup %1141  ;;  %v65_v50 = vpack.c.bf16 %v1704_v44, %v1699_v43 }
  0xbb   :  { %1143 = vtanh.f32 %v190_v53  ;;  %772 = vmatmul.bf16.vlgmr.msra.gmra.mxu3 %v684_v56 }
  0xbc   :  { %1145 = vtanh.f32 %v578_v1 }
  0xbf   :  { %v579_v3 = vpop.f32.mrf.mxu2 }
  0xc0   :  { %v580_v5 = vadd.f32 %v1645_v32, %v579_v3  ;;  %v192_v6 = vpop.f32.mrf.mxu0 }
  0xc1   :  { %v1144_v9 = vpop.eup %1143  ;;  %v193_v11 = vadd.f32 %v1639_v28, %v192_v6 }
  0xc2   :  { %1147 = vtanh.f32 %v580_v5  ;;  %v295_v10 = vpack.c.bf16 %v1144_v9, %v1142_v2  ;;  %v1146_v12 = vpop.eup %1145 }
  0xc3   :  { %231 = vmatmul.bf16.gmra.mxu0 %v63_v4  ;;  %1149 = vtanh.f32 %v193_v11 }
  0xc4   :  { %621 = vmatmul.bf16.gmra.mxu2 %v63_v4  ;;  %387 = vmatmul.bf16.gmra.mxu1 %v295_v10 }
  0xc7   :  { %v582_v13 = vpop.f32.mrf.mxu2 }
  0xc8   :  { %v1148_v14 = vpop.eup %1147  ;;  %v194_v15 = vpop.f32.mrf.mxu0  ;;  %v583_v22 = vadd.f32 %v1645_v32, %v582_v13  ;;  %v1720_v13 = vld [vmem:[%s1866_s0 + $0xd8] sm:$0xff] }
  0xc9   :  { %v195_v16 = vadd.f32 %v1639_v28, %v194_v15  ;;  %v685_v19 = vpack.c.bf16 %v1148_v14, %v1146_v12  ;;  %v1150_v23 = vpop.eup %1149  ;;  %v1715_v12 = vld [vmem:[%s1866_s0 + $0xd0] sm:$0xff] }
  0xcb   :  { %1151 = vtanh.f32 %v195_v16  ;;  %777 = vmatmul.bf16.gmra.mxu3 %v685_v19  ;;  %v66_v19 = vpack.c.bf16 %v1720_v13, %v1715_v12 }
  0xcc   :  { %1153 = vtanh.f32 %v583_v22 }
  0xcf   :  { %v584_v26 = vpop.f32.mrf.mxu2 }
  0xd0   :  { %v585_v29 = vadd.f32 %v1645_v32, %v584_v26  ;;  %v197_v30 = vpop.f32.mrf.mxu0 }
  0xd1   :  { %v1152_v31 = vpop.eup %1151  ;;  %v198_v36 = vadd.f32 %v1639_v28, %v197_v30 }
  0xd2   :  { %1155 = vtanh.f32 %v585_v29  ;;  %v296_v33 = vpack.c.bf16 %v1152_v31, %v1150_v23  ;;  %v1154_v37 = vpop.eup %1153 }
  0xd3   :  { %236 = vmatmul.bf16.gmra.mxu0 %v64_v27  ;;  %1157 = vtanh.f32 %v198_v36 }
  0xd4   :  { %626 = vmatmul.bf16.gmra.mxu2 %v64_v27  ;;  %392 = vmatmul.bf16.gmra.mxu1 %v296_v33 }
  0xd7   :  { %v587_v38 = vpop.f32.mrf.mxu2 }
  0xd8   :  { %v1156_v39 = vpop.eup %1155  ;;  %v199_v40 = vpop.f32.mrf.mxu0  ;;  %v588_v45 = vadd.f32 %v1645_v32, %v587_v38 }
  0xd9   :  { %v200_v41 = vadd.f32 %v1639_v28, %v199_v40  ;;  %v686_v42 = vpack.c.bf16 %v1156_v39, %v1154_v37  ;;  %v1158_v46 = vpop.eup %1157  ;;  %v1731_v39 = vld [vmem:[%s1866_s0 + $0xe0] sm:$0xff]  ;;  %v1736_v40 = vld [vmem:[%s1866_s0 + $0xe8] sm:$0xff] }
  0xdb   :  { %1159 = vtanh.f32 %v200_v41  ;;  %782 = vmatmul.bf16.gmra.mxu3 %v686_v42 }
  0xdc   :  { %1161 = vtanh.f32 %v588_v45 }
  0xdf   :  { %v589_v49 = vpop.f32.mrf.mxu2 }
  0xe0   :  { %v590_v53 = vadd.f32 %v1645_v32, %v589_v49  ;;  %v202_v56 = vpop.f32.mrf.mxu0 }
  0xe1   :  { %v1160_v1 = vpop.eup %1159  ;;  %v203_v3 = vadd.f32 %v1639_v28, %v202_v56 }
  0xe2   :  { %1163 = vtanh.f32 %v590_v53  ;;  %v297_v2 = vpack.c.bf16 %v1160_v1, %v1158_v46  ;;  %v1162_v4 = vpop.eup %1161  ;;  %v67_v46 = vpack.c.bf16 %v1736_v40, %v1731_v39 }
  0xe3   :  { %241 = vmatmul.bf16.gmra.mxu0 %v65_v50  ;;  %1165 = vtanh.f32 %v203_v3 }
  0xe4   :  { %631 = vmatmul.bf16.gmra.mxu2 %v65_v50  ;;  %397 = vmatmul.bf16.gmra.mxu1 %v297_v2 }
  0xe7   :  { %v592_v5 = vpop.f32.mrf.mxu2 }
  0xe8   :  { %v1164_v6 = vpop.eup %1163  ;;  %v204_v9 = vpop.f32.mrf.mxu0  ;;  %v593_v14 = vadd.f32 %v1645_v32, %v592_v5 }
  0xe9   :  { %v205_v10 = vadd.f32 %v1639_v28, %v204_v9  ;;  %v687_v11 = vpack.c.bf16 %v1164_v6, %v1162_v4  ;;  %v1166_v15 = vpop.eup %1165 }
  0xeb   :  { %1167 = vtanh.f32 %v205_v10  ;;  %787 = vmatmul.bf16.gmra.mxu3 %v687_v11  ;;  %v1747_v10 = vld [vmem:[%s1866_s0 + $0xf0] sm:$0xff]  ;;  %v1752_v11 = vld [vmem:[%s1866_s0 + $0xf8] sm:$0xff] }
  0xec   :  { %1169 = vtanh.f32 %v593_v14 }
  0xef   :  { %v594_v16 = vpop.f32.mrf.mxu2 }
  0xf0   :  { %v595_v22 = vadd.f32 %v1645_v32, %v594_v16  ;;  %v207_v23 = vpop.f32.mrf.mxu0 }
  0xf1   :  { %v1168_v26 = vpop.eup %1167  ;;  %v208_v29 = vadd.f32 %v1639_v28, %v207_v23 }
  0xf2   :  { %1171 = vtanh.f32 %v595_v22  ;;  %v298_v27 = vpack.c.bf16 %v1168_v26, %v1166_v15  ;;  %v1170_v30 = vpop.eup %1169 }
  0xf3   :  { %246 = vmatmul.bf16.gmra.mxu0 %v66_v19  ;;  %1173 = vtanh.f32 %v208_v29 }
  0xf4   :  { %636 = vmatmul.bf16.gmra.mxu2 %v66_v19  ;;  %402 = vmatmul.bf16.gmra.mxu1 %v298_v27  ;;  %v68_v19 = vpack.c.bf16 %v1752_v11, %v1747_v10 }
  0xf7   :  { %v597_v31 = vpop.f32.mrf.mxu2 }
  0xf8   :  { %v1172_v33 = vpop.eup %1171  ;;  %v209_v36 = vpop.f32.mrf.mxu0  ;;  %v598_v41 = vadd.f32 %v1645_v32, %v597_v31 }
  0xf9   :  { %v210_v37 = vadd.f32 %v1639_v28, %v209_v36  ;;  %v688_v38 = vpack.c.bf16 %v1172_v33, %v1170_v30  ;;  %v1174_v42 = vpop.eup %1173 }
  0xfb   :  { %1175 = vtanh.f32 %v210_v37  ;;  %792 = vmatmul.bf16.gmra.mxu3 %v688_v38 }
  0xfc   :  { %1177 = vtanh.f32 %v598_v41 }
  0xff   :  { %v599_v45 = vpop.f32.mrf.mxu2 }
 0x100   :  { %v600_v49 = vadd.f32 %v1645_v32, %v599_v45  ;;  %v212_v50 = vpop.f32.mrf.mxu0 }
 0x101   :  { %v1176_v53 = vpop.eup %1175  ;;  %v213_v1 = vadd.f32 %v1639_v28, %v212_v50 }
 0x102   :  { %1179 = vtanh.f32 %v600_v49  ;;  %v299_v56 = vpack.c.bf16 %v1176_v53, %v1174_v42  ;;  %v1178_v2 = vpop.eup %1177 }
 0x103   :  { %251 = vmatmul.bf16.gmra.mxu0 %v67_v46  ;;  %1181 = vtanh.f32 %v213_v1 }
 0x104   :  { %641 = vmatmul.bf16.gmra.mxu2 %v67_v46  ;;  %407 = vmatmul.bf16.gmra.mxu1 %v299_v56 }
 0x107   :  { %v602_v3 = vpop.f32.mrf.mxu2 }
 0x108   :  { %v1180_v4 = vpop.eup %1179  ;;  %v214_v5 = vpop.f32.mrf.mxu0  ;;  %v603_v14 = vadd.f32 %v1645_v32, %v602_v3 }
 0x109   :  { %v215_v6 = vadd.f32 %v1639_v28, %v214_v5  ;;  %v689_v9 = vpack.c.bf16 %v1180_v4, %v1178_v2  ;;  %v1182_v15 = vpop.eup %1181 }
 0x10b   :  { %1183 = vtanh.f32 %v215_v6  ;;  %797 = vmatmul.bf16.gmra.mxu3 %v689_v9 }
 0x10c   :  { %1185 = vtanh.f32 %v603_v14 }
 0x10f   :  { %v604_v16 = vpop.f32.mrf.mxu2 }
 0x110   :  { %v605_v22 = vadd.f32 %v1645_v32, %v604_v16  ;;  %v217_v23 = vpop.f32.mrf.mxu0 }
 0x111   :  { %v1184_v26 = vpop.eup %1183  ;;  %v218_v29 = vadd.f32 %v1639_v28, %v217_v23 }
 0x112   :  { %1187 = vtanh.f32 %v605_v22  ;;  %v300_v27 = vpack.c.bf16 %v1184_v26, %v1182_v15  ;;  %v1186_v30 = vpop.eup %1185 }
 0x113   :  { %256 = vmatmul.bf16.gmra.mxu0 %v68_v19  ;;  %1189 = vtanh.f32 %v218_v29 }
 0x114   :  { %646 = vmatmul.bf16.gmra.mxu2 %v68_v19  ;;  %412 = vmatmul.bf16.gmra.mxu1 %v300_v27  ;;  %v1769_v27 = vld [vmem:[%s1870_s4] ss:$0 sm:$0xff]  ;;  %s1351_s4 = smov [#allocation2]  }
 0x115   :  { %s953_s26 = sshll.u32 %s1351_s4, 4  ;;  %s954_s26 = int_to_ptr.vmem [resolvable:$true] %s953_s26 }
 0x117   :  { %v607_v31 = vpop.f32.mrf.mxu2 }
 0x118   :  { %v1188_v33 = vpop.eup %1187  ;;  %v219_v36 = vpop.f32.mrf.mxu0  ;;  %v608_v41 = vadd.f32 %v1645_v32, %v607_v31 }
 0x119   :  { %v220_v37 = vadd.f32 %v1639_v28, %v219_v36  ;;  %v690_v38 = vpack.c.bf16 %v1188_v33, %v1186_v30  ;;  %v1190_v42 = vpop.eup %1189 }
 0x11b   :  { %1191 = vtanh.f32 %v220_v37  ;;  %802 = vmatmul.bf16.gmra.mxu3 %v690_v38  ;;  %v73_v37 = vadd.f32 %v1769_v27, %v1483_v47  ;;  %v74_v47 = vadd.f32 %v1769_v27, %v1488_v48  ;;  %v75_v48 = vadd.f32 %v1769_v27, %v1495_v51 }
 0x11c   :  { %1193 = vtanh.f32 %v608_v41 }
 0x11f   :  { %v609_v45 = vpop.f32.mrf.mxu2 }
 0x120   :  { %v610_v46 = vadd.f32 %v1645_v32, %v609_v45  ;;  %v222_v49 = vpop.f32.mrf.mxu0 }
 0x121   :  { %v1192_v50 = vpop.eup %1191  ;;  %v223_v56 = vadd.f32 %v1639_v28, %v222_v49 }
 0x122   :  { %1195 = vtanh.f32 %v610_v46  ;;  %v301_v53 = vpack.c.bf16 %v1192_v50, %v1190_v42  ;;  %v1194_v1 = vpop.eup %1193 }
 0x123   :  { %1197 = vtanh.f32 %v223_v56 }
 0x124   :  { %417 = vmatmul.bf16.gmra.mxu1 %v301_v53 }
 0x127   :  { %v612_v2 = vpop.f32.mrf.mxu2 }
 0x128   :  { %v1196_v3 = vpop.eup %1195  ;;  %v224_v4 = vpop.f32.mrf.mxu0  ;;  %v613_v9 = vadd.f32 %v1645_v32, %v612_v2 }
 0x129   :  { %v225_v5 = vadd.f32 %v1639_v28, %v224_v4  ;;  %v691_v6 = vpack.c.bf16 %v1196_v3, %v1194_v1  ;;  %v1198_v14 = vpop.eup %1197 }
 0x12b   :  { %1199 = vtanh.f32 %v225_v5  ;;  %807 = vmatmul.bf16.gmra.mxu3 %v691_v6 }
 0x12c   :  { %1201 = vtanh.f32 %v613_v9 }
 0x12f   :  { %v614_v15 = vpop.f32.mrf.mxu2 }
 0x130   :  { %v615_v16 = vadd.f32 %v1645_v32, %v614_v15  ;;  %v227_v19 = vpop.f32.mrf.mxu0 }
 0x131   :  { %v1200_v22 = vpop.eup %1199  ;;  %v383_v23 = vpop.f32.mrf.mxu1  ;;  %v228_v29 = vadd.f32 %v1639_v28, %v227_v19 }
 0x132   :  { %1203 = vtanh.f32 %v615_v16  ;;  %v302_v26 = vpack.c.bf16 %v1200_v22, %v1198_v14  ;;  %v1202_v30 = vpop.eup %1201  ;;  %v463_v46 = vadd.f32 %v383_v23, %v73_v37 }
 0x133   :  { %1205 = vtanh.f32 %v228_v29 }
 0x134   :  { %422 = vmatmul.bf16.gmra.mxu1 %v302_v26 }
 0x137   :  { %v617_v31 = vpop.f32.mrf.mxu2 }
 0x138   :  { %v1204_v33 = vpop.eup %1203  ;;  %v229_v36 = vpop.f32.mrf.mxu0  ;;  %v618_v45 = vadd.f32 %v1645_v32, %v617_v31 }
 0x139   :  { %v230_v38 = vadd.f32 %v1639_v28, %v229_v36  ;;  %v385_v41 = vpop.f32.mrf.mxu1  ;;  %v692_v42 = vpack.c.bf16 %v1204_v33, %v1202_v30  ;;  %v1206_v50 = vpop.eup %1205 }
 0x13a   :  { %v464_v9 = vadd.f32 %v385_v41, %v74_v47 }
 0x13b   :  { %1207 = vtanh.f32 %v230_v38  ;;  %812 = vmatmul.bf16.gmra.mxu3 %v692_v42 }
 0x13c   :  { %1209 = vtanh.f32 %v618_v45 }
 0x13e   :  { %v773_v49 = vpop.f32.mrf.mxu3 }
 0x13f   :  { %v853_v53 = vadd.f32 %v773_v49, %v463_v46  ;;  %v619_v56 = vpop.f32.mrf.mxu2 }
 0x140   :  { %v620_v1 = vadd.f32 %v1645_v32, %v619_v56  ;;  %v232_v2 = vpop.f32.mrf.mxu0 }
 0x141   :  { %v1208_v3 = vpop.eup %1207  ;;  %1211 = vtanh.f32 %v853_v53  ;;  %v388_v4 = vpop.f32.mrf.mxu1  ;;  %v233_v6 = vadd.f32 %v1639_v28, %v232_v2 }
 0x142   :  { %1213 = vtanh.f32 %v620_v1  ;;  %v303_v5 = vpack.c.bf16 %v1208_v3, %v1206_v50  ;;  %v1210_v14 = vpop.eup %1209  ;;  %v465_v36 = vadd.f32 %v388_v4, %v75_v48  ;;  %v76_v50 = vadd.f32 %v1769_v27, %v1500_v52 }
 0x143   :  { %1215 = vtanh.f32 %v233_v6  ;;  %v77_v52 = vadd.f32 %v1769_v27, %v1507_v54 }
 0x144   :  { %427 = vmatmul.bf16.gmra.mxu1 %v303_v5 }
 0x146   :  { %v775_v15 = vpop.f32.mrf.mxu3 }
 0x147   :  { %v1212_v16 = vpop.eup %1211  ;;  %v854_v19 = vadd.f32 %v775_v15, %v464_v9  ;;  %v622_v22 = vpop.f32.mrf.mxu2 }
 0x148   :  { %v1214_v23 = vpop.eup %1213  ;;  %917 = vst [vmem:[#allocation2] sm:$0xff] %v1212_v16  ;;  %v234_v26 = vpop.f32.mrf.mxu0  ;;  %v623_v33 = vadd.f32 %v1645_v32, %v622_v22 }
 0x149   :  { %1217 = vtanh.f32 %v854_v19  ;;  %v235_v29 = vadd.f32 %v1639_v28, %v234_v26  ;;  %v390_v30 = vpop.f32.mrf.mxu1  ;;  %v693_v31 = vpack.c.bf16 %v1214_v23, %v1210_v14  ;;  %v1216_v37 = vpop.eup %1215 }
 0x14a   :  { %v466_v2 = vadd.f32 %v390_v30, %v76_v50 }
 0x14b   :  { %1219 = vtanh.f32 %v235_v29  ;;  %817 = vmatmul.bf16.gmra.mxu3 %v693_v31 }
 0x14c   :  { %1221 = vtanh.f32 %v623_v33 }
 0x14e   :  { %v778_v38 = vpop.f32.mrf.mxu3 }
 0x14f   :  { %v1218_v41 = vpop.eup %1217  ;;  %v855_v42 = vadd.f32 %v778_v38, %v465_v36  ;;  %v624_v45 = vpop.f32.mrf.mxu2 }
 0x150   :  { %918 = vst [vmem:[#allocation2 + $0x8] sm:$0xff] %v1218_v41  ;;  %v625_v46 = vadd.f32 %v1645_v32, %v624_v45  ;;  %v237_v51 = vpop.f32.mrf.mxu0 }
 0x151   :  { %v1220_v49 = vpop.eup %1219  ;;  %1223 = vtanh.f32 %v855_v42  ;;  %v393_v53 = vpop.f32.mrf.mxu1  ;;  %v238_v1 = vadd.f32 %v1639_v28, %v237_v51 }
 0x152   :  { %1225 = vtanh.f32 %v625_v46  ;;  %v304_v56 = vpack.c.bf16 %v1220_v49, %v1216_v37  ;;  %v1222_v3 = vpop.eup %1221  ;;  %v467_v23 = vadd.f32 %v393_v53, %v77_v52  ;;  %v78_v37 = vadd.f32 %v1769_v27, %v1512_v55 }
 0x153   :  { %1227 = vtanh.f32 %v238_v1  ;;  %v79_v55 = vadd.f32 %v1769_v27, %v1519_v57 }
 0x154   :  { %432 = vmatmul.bf16.gmra.mxu1 %v304_v56 }
 0x156   :  { %v780_v47 = vpop.f32.mrf.mxu3 }
 0x157   :  { %v1224_v4 = vpop.eup %1223  ;;  %v856_v5 = vadd.f32 %v780_v47, %v466_v2  ;;  %v627_v6 = vpop.f32.mrf.mxu2 }
 0x158   :  { %v1226_v9 = vpop.eup %1225  ;;  %919 = vst [vmem:[#allocation2 + $0x10] sm:$0xff] %v1224_v4  ;;  %v239_v14 = vpop.f32.mrf.mxu0  ;;  %v628_v22 = vadd.f32 %v1645_v32, %v627_v6 }
 0x159   :  { %1229 = vtanh.f32 %v856_v5  ;;  %v240_v15 = vadd.f32 %v1639_v28, %v239_v14  ;;  %v395_v16 = vpop.f32.mrf.mxu1  ;;  %v694_v19 = vpack.c.bf16 %v1226_v9, %v1222_v3  ;;  %v1228_v26 = vpop.eup %1227 }
 0x15a   :  { %v468_v45 = vadd.f32 %v395_v16, %v78_v37 }
 0x15b   :  { %1231 = vtanh.f32 %v240_v15  ;;  %822 = vmatmul.bf16.gmra.mxu3 %v694_v19 }
 0x15c   :  { %1233 = vtanh.f32 %v628_v22  ;;  %v80_v22 = vadd.f32 %v1769_v27, %v1524_v58  ;;  %v81_v58 = vadd.f32 %v1769_v27, %v1531_v60 }
 0x15e   :  { %v783_v48 = vpop.f32.mrf.mxu3 }
 0x15f   :  { %v1230_v29 = vpop.eup %1229  ;;  %v857_v30 = vadd.f32 %v783_v48, %v467_v23  ;;  %v629_v31 = vpop.f32.mrf.mxu2 }
 0x160   :  { %920 = vst [vmem:[#allocation2 + $0x18] sm:$0xff] %v1230_v29  ;;  %v630_v33 = vadd.f32 %v1645_v32, %v629_v31  ;;  %v242_v54 = vpop.f32.mrf.mxu0 }
 0x161   :  { %v1232_v36 = vpop.eup %1231  ;;  %1235 = vtanh.f32 %v857_v30  ;;  %v398_v38 = vpop.f32.mrf.mxu1  ;;  %v243_v42 = vadd.f32 %v1639_v28, %v242_v54 }
 0x162   :  { %1237 = vtanh.f32 %v630_v33  ;;  %v305_v41 = vpack.c.bf16 %v1232_v36, %v1228_v26  ;;  %v1234_v46 = vpop.eup %1233  ;;  %v469_v5 = vadd.f32 %v398_v38, %v79_v55 }
 0x163   :  { %1239 = vtanh.f32 %v243_v42 }
 0x164   :  { %437 = vmatmul.bf16.gmra.mxu1 %v305_v41 }
 0x166   :  { %v785_v51 = vpop.f32.mrf.mxu3 }
 0x167   :  { %v1236_v49 = vpop.eup %1235  ;;  %v858_v50 = vadd.f32 %v785_v51, %v468_v45  ;;  %v632_v53 = vpop.f32.mrf.mxu2 }
 0x168   :  { %v1238_v56 = vpop.eup %1237  ;;  %921 = vst [vmem:[#allocation2 + $0x20] sm:$0xff] %v1236_v49  ;;  %v244_v1 = vpop.f32.mrf.mxu0  ;;  %v633_v4 = vadd.f32 %v1645_v32, %v632_v53 }
 0x169   :  { %1241 = vtanh.f32 %v858_v50  ;;  %v245_v2 = vadd.f32 %v1639_v28, %v244_v1  ;;  %v400_v3 = vpop.f32.mrf.mxu1  ;;  %v695_v47 = vpack.c.bf16 %v1238_v56, %v1234_v46  ;;  %v1240_v6 = vpop.eup %1239 }
 0x16a   :  { %v470_v29 = vadd.f32 %v400_v3, %v80_v22  ;;  %v82_v3 = vadd.f32 %v1769_v27, %v1536_v61  ;;  %v83_v61 = vadd.f32 %v1769_v27, %v1543_v63 }
 0x16b   :  { %1243 = vtanh.f32 %v245_v2  ;;  %827 = vmatmul.bf16.gmra.mxu3 %v695_v47 }
 0x16c   :  { %1245 = vtanh.f32 %v633_v4 }
 0x16e   :  { %v788_v9 = vpop.f32.mrf.mxu3 }
 0x16f   :  { %v1242_v14 = vpop.eup %1241  ;;  %v859_v52 = vadd.f32 %v788_v9, %v469_v5  ;;  %v634_v15 = vpop.f32.mrf.mxu2 }
 0x170   :  { %922 = vst [vmem:[#allocation2 + $0x28] sm:$0xff] %v1242_v14  ;;  %v635_v16 = vadd.f32 %v1645_v32, %v634_v15  ;;  %v247_v57 = vpop.f32.mrf.mxu0 }
 0x171   :  { %v1244_v19 = vpop.eup %1243  ;;  %1247 = vtanh.f32 %v859_v52  ;;  %v403_v23 = vpop.f32.mrf.mxu1  ;;  %v248_v48 = vadd.f32 %v1639_v28, %v247_v57 }
 0x172   :  { %1249 = vtanh.f32 %v635_v16  ;;  %v306_v26 = vpack.c.bf16 %v1244_v19, %v1240_v6  ;;  %v1246_v30 = vpop.eup %1245  ;;  %v471_v51 = vadd.f32 %v403_v23, %v81_v58  ;;  %v84_v58 = vadd.f32 %v1769_v27, %v1548_v0 }
 0x173   :  { %1251 = vtanh.f32 %v248_v48  ;;  %v85_v0 = vadd.f32 %v1769_v27, %v1570_v7 }
 0x174   :  { %442 = vmatmul.bf16.gmra.mxu1 %v306_v26 }
 0x176   :  { %v790_v31 = vpop.f32.mrf.mxu3 }
 0x177   :  { %v1248_v33 = vpop.eup %1247  ;;  %v860_v54 = vadd.f32 %v790_v31, %v470_v29  ;;  %v637_v36 = vpop.f32.mrf.mxu2 }
 0x178   :  { %v1250_v37 = vpop.eup %1249  ;;  %923 = vst [vmem:[#allocation2 + $0x30] sm:$0xff] %v1248_v33  ;;  %v249_v38 = vpop.f32.mrf.mxu0  ;;  %v638_v46 = vadd.f32 %v1645_v32, %v637_v36 }
 0x179   :  { %1253 = vtanh.f32 %v860_v54  ;;  %v250_v41 = vadd.f32 %v1639_v28, %v249_v38  ;;  %v405_v42 = vpop.f32.mrf.mxu1  ;;  %v696_v45 = vpack.c.bf16 %v1250_v37, %v1246_v30  ;;  %v1252_v49 = vpop.eup %1251 }
 0x17a   :  { %v472_v6 = vadd.f32 %v405_v42, %v82_v3 }
 0x17b   :  { %1255 = vtanh.f32 %v250_v41  ;;  %832 = vmatmul.bf16.gmra.mxu3 %v696_v45 }
 0x17c   :  { %1257 = vtanh.f32 %v638_v46 }
 0x17e   :  { %v793_v50 = vpop.f32.mrf.mxu3 }
 0x17f   :  { %v1254_v53 = vpop.eup %1253  ;;  %v861_v56 = vadd.f32 %v793_v50, %v471_v51  ;;  %v639_v1 = vpop.f32.mrf.mxu2 }
 0x180   :  { %924 = vst [vmem:[#allocation2 + $0x38] sm:$0xff] %v1254_v53  ;;  %v640_v55 = vadd.f32 %v1645_v32, %v639_v1  ;;  %v252_v60 = vpop.f32.mrf.mxu0 }
 0x181   :  { %v1256_v2 = vpop.eup %1255  ;;  %1259 = vtanh.f32 %v861_v56  ;;  %v408_v47 = vpop.f32.mrf.mxu1  ;;  %v253_v5 = vadd.f32 %v1639_v28, %v252_v60 }
 0x182   :  { %1261 = vtanh.f32 %v640_v55  ;;  %v307_v4 = vpack.c.bf16 %v1256_v2, %v1252_v49  ;;  %v1258_v9 = vpop.eup %1257  ;;  %v473_v29 = vadd.f32 %v408_v47, %v83_v61 }
 0x183   :  { %1263 = vtanh.f32 %v253_v5 }
 0x184   :  { %447 = vmatmul.bf16.gmra.mxu1 %v307_v4 }
 0x186   :  { %v795_v14 = vpop.f32.mrf.mxu3 }
 0x187   :  { %v1260_v52 = vpop.eup %1259  ;;  %v862_v15 = vadd.f32 %v795_v14, %v472_v6  ;;  %v642_v16 = vpop.f32.mrf.mxu2 }
 0x188   :  { %v1262_v57 = vpop.eup %1261  ;;  %925 = vst [vmem:[#allocation2 + $0x40] sm:$0xff] %v1260_v52  ;;  %v254_v19 = vpop.f32.mrf.mxu0  ;;  %v643_v48 = vadd.f32 %v1645_v32, %v642_v16 }
 0x189   :  { %1265 = vtanh.f32 %v862_v15  ;;  %v255_v22 = vadd.f32 %v1639_v28, %v254_v19  ;;  %v410_v23 = vpop.f32.mrf.mxu1  ;;  %v697_v26 = vpack.c.bf16 %v1262_v57, %v1258_v9  ;;  %v1264_v30 = vpop.eup %1263 }
 0x18a   :  { %v474_v46 = vadd.f32 %v410_v23, %v84_v58 }
 0x18b   :  { %1267 = vtanh.f32 %v255_v22  ;;  %837 = vmatmul.bf16.gmra.mxu3 %v697_v26 }
 0x18c   :  { %1269 = vtanh.f32 %v643_v48 }
 0x18e   :  { %v798_v31 = vpop.f32.mrf.mxu3 }
 0x18f   :  { %v1266_v33 = vpop.eup %1265  ;;  %v863_v54 = vadd.f32 %v798_v31, %v473_v29  ;;  %v644_v36 = vpop.f32.mrf.mxu2  ;;  %v87_v29 = vadd.f32 %v1769_v27, %v1603_v17  ;;  %v89_v17 = vadd.f32 %v1769_v27, %v1627_v24  ;;  %v91_v24 = vadd.f32 %v1769_v27, %v1651_v34 }
 0x190   :  { %926 = vst [vmem:[#allocation2 + $0x48] sm:$0xff] %v1266_v33  ;;  %v645_v37 = vadd.f32 %v1645_v32, %v644_v36  ;;  %v257_v63 = vpop.f32.mrf.mxu0  ;;  %v88_v36 = vadd.f32 %v1769_v27, %v1608_v18  ;;  %v90_v18 = vadd.f32 %v1769_v27, %v1632_v25  ;;  %v92_v25 = vadd.f32 %v1769_v27, %v1656_v35 }
 0x191   :  { %v1268_v38 = vpop.eup %1267  ;;  %1271 = vtanh.f32 %v863_v54  ;;  %v413_v41 = vpop.f32.mrf.mxu1  ;;  %v258_v45 = vadd.f32 %v1639_v28, %v257_v63  ;;  %v93_v34 = vadd.f32 %v1769_v27, %v1667_v59  ;;  %v94_v35 = vadd.f32 %v1769_v27, %v1672_v62 }
 0x192   :  { %1273 = vtanh.f32 %v645_v37  ;;  %v308_v42 = vpack.c.bf16 %v1268_v38, %v1264_v30  ;;  %v1270_v51 = vpop.eup %1269  ;;  %v475_v4 = vadd.f32 %v413_v41, %v85_v0  ;;  %v95_v59 = vadd.f32 %v1769_v27, %v1683_v20 }
 0x193   :  { %1275 = vtanh.f32 %v258_v45  ;;  %v96_v62 = vadd.f32 %v1769_v27, %v1688_v21  ;;  %v97_v20 = vadd.f32 %v1769_v27, %v1699_v43  ;;  %v98_v21 = vadd.f32 %v1769_v27, %v1704_v44 }
 0x194   :  { %452 = vmatmul.bf16.gmra.mxu1 %v308_v42  ;;  %v99_v43 = vadd.f32 %v1769_v27, %v1715_v12  ;;  %v100_v44 = vadd.f32 %v1769_v27, %v1720_v13  ;;  %v101_v12 = vadd.f32 %v1769_v27, %v1731_v39  ;;  %v102_v13 = vadd.f32 %v1769_v27, %v1736_v40 }
 0x195   :  { %v103_v39 = vadd.f32 %v1769_v27, %v1747_v10 }
 0x196   :  { %v800_v49 = vpop.f32.mrf.mxu3 }
 0x197   :  { %v1272_v50 = vpop.eup %1271  ;;  %v864_v53 = vadd.f32 %v800_v49, %v474_v46  ;;  %v647_v56 = vpop.f32.mrf.mxu2 }
 0x198   :  { %v1274_v1 = vpop.eup %1273  ;;  %927 = vst [vmem:[#allocation2 + $0x50] sm:$0xff] %v1272_v50  ;;  %v259_v55 = vpop.f32.mrf.mxu0  ;;  %v648_v47 = vadd.f32 %v1645_v32, %v647_v56 }
 0x199   :  { %1277 = vtanh.f32 %v864_v53  ;;  %v260_v60 = vadd.f32 %v1639_v28, %v259_v55  ;;  %v415_v2 = vpop.f32.mrf.mxu1  ;;  %v698_v3 = vpack.c.bf16 %v1274_v1, %v1270_v51  ;;  %v1276_v5 = vpop.eup %1275  ;;  %v86_v28 = vadd.f32 %v1769_v27, %v1575_v8 }
 0x19b   :  { %1279 = vtanh.f32 %v260_v60  ;;  %842 = vmatmul.bf16.gmra.mxu3 %v698_v3  ;;  %v476_v19 = vadd.f32 %v415_v2, %v86_v28 }
 0x19c   :  { %1281 = vtanh.f32 %v648_v47 }
 0x19e   :  { %v803_v6 = vpop.f32.mrf.mxu3 }
 0x19f   :  { %v1278_v9 = vpop.eup %1277  ;;  %v865_v14 = vadd.f32 %v803_v6, %v475_v4  ;;  %v649_v52 = vpop.f32.mrf.mxu2 }
 0x1a0   :  { %928 = vst [vmem:[#allocation2 + $0x58] sm:$0xff] %v1278_v9  ;;  %v650_v15 = vadd.f32 %v1645_v32, %v649_v52 }
 0x1a1   :  { %v1280_v7 = vpop.eup %1279  ;;  %1283 = vtanh.f32 %v865_v14  ;;  %v418_v16 = vpop.f32.mrf.mxu1 }
 0x1a2   :  { %1285 = vtanh.f32 %v650_v15  ;;  %v309_v57 = vpack.c.bf16 %v1280_v7, %v1276_v5  ;;  %v1282_v61 = vpop.eup %1281  ;;  %v477_v8 = vadd.f32 %v418_v16, %v87_v29 }
 0x1a4   :  { %457 = vmatmul.bf16.gmra.mxu1 %v309_v57 }
 0x1a6   :  { %v805_v22 = vpop.f32.mrf.mxu3 }
 0x1a7   :  { %v1284_v23 = vpop.eup %1283  ;;  %v866_v26 = vadd.f32 %v805_v22, %v476_v19 }
 0x1a8   :  { %v1286_v48 = vpop.eup %1285  ;;  %929 = vst [vmem:[#allocation2 + $0x60] sm:$0xff] %v1284_v23 }
 0x1a9   :  { %1287 = vtanh.f32 %v866_v26  ;;  %v420_v32 = vpop.f32.mrf.mxu1  ;;  %v699_v30 = vpack.c.bf16 %v1286_v48, %v1282_v61 }
 0x1aa   :  { %v478_v63 = vadd.f32 %v420_v32, %v88_v36 }
 0x1ab   :  { %847 = vmatmul.bf16.gmra.mxu3 %v699_v30 }
 0x1ae   :  { %v808_v31 = vpop.f32.mrf.mxu3 }
 0x1af   :  { %v1288_v33 = vpop.eup %1287  ;;  %v867_v54 = vadd.f32 %v808_v31, %v477_v8 }
 0x1b0   :  { %930 = vst [vmem:[#allocation2 + $0x68] sm:$0xff] %v1288_v33 }
 0x1b1   :  { %1289 = vtanh.f32 %v867_v54  ;;  %v423_v37 = vpop.f32.mrf.mxu1 }
 0x1b2   :  { %v479_v45 = vadd.f32 %v423_v37, %v89_v17 }
 0x1b6   :  { %v810_v38 = vpop.f32.mrf.mxu3 }
 0x1b7   :  { %v1290_v58 = vpop.eup %1289  ;;  %v868_v41 = vadd.f32 %v810_v38, %v478_v63 }
 0x1b8   :  { %931 = vst [vmem:[#allocation2 + $0x70] sm:$0xff] %v1290_v58 }
 0x1b9   :  { %1291 = vtanh.f32 %v868_v41  ;;  %v425_v42 = vpop.f32.mrf.mxu1 }
 0x1ba   :  { %v480_v53 = vadd.f32 %v425_v42, %v90_v18 }
 0x1be   :  { %v813_v46 = vpop.f32.mrf.mxu3 }
 0x1bf   :  { %v1292_v51 = vpop.eup %1291  ;;  %v869_v49 = vadd.f32 %v813_v46, %v479_v45 }
 0x1c0   :  { %932 = vst [vmem:[#allocation2 + $0x78] sm:$0xff] %v1292_v51 }
 0x1c1   :  { %1293 = vtanh.f32 %v869_v49  ;;  %v428_v50 = vpop.f32.mrf.mxu1 }
 0x1c2   :  { %v481_v60 = vadd.f32 %v428_v50, %v91_v24 }
 0x1c6   :  { %v815_v56 = vpop.f32.mrf.mxu3 }
 0x1c7   :  { %v1294_v1 = vpop.eup %1293  ;;  %v870_v55 = vadd.f32 %v815_v56, %v480_v53 }
 0x1c8   :  { %933 = vst [vmem:[#allocation2 + $0x80] sm:$0xff] %v1294_v1 }
 0x1c9   :  { %1295 = vtanh.f32 %v870_v55  ;;  %v430_v0 = vpop.f32.mrf.mxu1 }
 0x1ca   :  { %v482_v5 = vadd.f32 %v430_v0, %v92_v25 }
 0x1ce   :  { %v818_v2 = vpop.f32.mrf.mxu3 }
 0x1cf   :  { %v1296_v3 = vpop.eup %1295  ;;  %v871_v47 = vadd.f32 %v818_v2, %v481_v60 }
 0x1d0   :  { %934 = vst [vmem:[#allocation2 + $0x88] sm:$0xff] %v1296_v3 }
 0x1d1   :  { %1297 = vtanh.f32 %v871_v47  ;;  %v433_v4 = vpop.f32.mrf.mxu1 }
 0x1d2   :  { %v483_v15 = vadd.f32 %v433_v4, %v93_v34 }
 0x1d6   :  { %v820_v6 = vpop.f32.mrf.mxu3 }
 0x1d7   :  { %v1298_v9 = vpop.eup %1297  ;;  %v872_v14 = vadd.f32 %v820_v6, %v482_v5 }
 0x1d8   :  { %935 = vst [vmem:[#allocation2 + $0x90] sm:$0xff] %v1298_v9 }
 0x1d9   :  { %1299 = vtanh.f32 %v872_v14  ;;  %v435_v52 = vpop.f32.mrf.mxu1 }
 0x1da   :  { %v484_v19 = vadd.f32 %v435_v52, %v94_v35 }
 0x1de   :  { %v823_v7 = vpop.f32.mrf.mxu3 }
 0x1df   :  { %v1300_v28 = vpop.eup %1299  ;;  %v873_v16 = vadd.f32 %v823_v7, %v483_v15 }
 0x1e0   :  { %936 = vst [vmem:[#allocation2 + $0x98] sm:$0xff] %v1300_v28 }
 0x1e1   :  { %1301 = vtanh.f32 %v873_v16  ;;  %v438_v57 = vpop.f32.mrf.mxu1  ;;  %v104_v16 = vadd.f32 %v1769_v27, %v1752_v11 }
 0x1e2   :  { %v485_v48 = vadd.f32 %v438_v57, %v95_v59 }
 0x1e6   :  { %v825_v61 = vpop.f32.mrf.mxu3 }
 0x1e7   :  { %v1302_v22 = vpop.eup %1301  ;;  %v874_v23 = vadd.f32 %v825_v61, %v484_v19 }
 0x1e8   :  { %937 = vst [vmem:[#allocation2 + $0xa0] sm:$0xff] %v1302_v22 }
 0x1e9   :  { %1303 = vtanh.f32 %v874_v23  ;;  %v440_v26 = vpop.f32.mrf.mxu1 }
 0x1ea   :  { %v486_v31 = vadd.f32 %v440_v26, %v96_v62 }
 0x1ee   :  { %v828_v29 = vpop.f32.mrf.mxu3 }
 0x1ef   :  { %v1304_v32 = vpop.eup %1303  ;;  %v875_v30 = vadd.f32 %v828_v29, %v485_v48 }
 0x1f0   :  { %938 = vst [vmem:[#allocation2 + $0xa8] sm:$0xff] %v1304_v32 }
 0x1f1   :  { %1305 = vtanh.f32 %v875_v30  ;;  %v443_v8 = vpop.f32.mrf.mxu1 }
 0x1f2   :  { %v487_v63 = vadd.f32 %v443_v8, %v97_v20 }
 0x1f6   :  { %v830_v33 = vpop.f32.mrf.mxu3 }
 0x1f7   :  { %v1306_v54 = vpop.eup %1305  ;;  %v876_v36 = vadd.f32 %v830_v33, %v486_v31 }
 0x1f8   :  { %939 = vst [vmem:[#allocation2 + $0xb0] sm:$0xff] %v1306_v54 }
 0x1f9   :  { %1307 = vtanh.f32 %v876_v36  ;;  %v445_v37 = vpop.f32.mrf.mxu1 }
 0x1fa   :  { %v488_v42 = vadd.f32 %v445_v37, %v98_v21 }
 0x1fe   :  { %v833_v38 = vpop.f32.mrf.mxu3 }
 0x1ff   :  { %v1308_v58 = vpop.eup %1307  ;;  %v877_v41 = vadd.f32 %v833_v38, %v487_v63 }
 0x200   :  { %940 = vst [vmem:[#allocation2 + $0xb8] sm:$0xff] %v1308_v58 }
 0x201   :  { %1309 = vtanh.f32 %v877_v41  ;;  %v448_v17 = vpop.f32.mrf.mxu1 }
 0x202   :  { %v489_v18 = vadd.f32 %v448_v17, %v99_v43 }
 0x206   :  { %v835_v45 = vpop.f32.mrf.mxu3 }
 0x207   :  { %v1310_v46 = vpop.eup %1309  ;;  %v878_v51 = vadd.f32 %v835_v45, %v488_v42 }
 0x208   :  { %941 = vst [vmem:[#allocation2 + $0xc0] sm:$0xff] %v1310_v46 }
 0x209   :  { %1311 = vtanh.f32 %v878_v51  ;;  %v450_v49 = vpop.f32.mrf.mxu1 }
 0x20a   :  { %v490_v55 = vadd.f32 %v450_v49, %v100_v44 }
 0x20e   :  { %v838_v50 = vpop.f32.mrf.mxu3 }
 0x20f   :  { %v1312_v53 = vpop.eup %1311  ;;  %v879_v56 = vadd.f32 %v838_v50, %v489_v18 }
 0x210   :  { %942 = vst [vmem:[#allocation2 + $0xc8] sm:$0xff] %v1312_v53 }
 0x211   :  { %1313 = vtanh.f32 %v879_v56  ;;  %v453_v1 = vpop.f32.mrf.mxu1 }
 0x212   :  { %v491_v2 = vadd.f32 %v453_v1, %v101_v12 }
 0x216   :  { %v840_v24 = vpop.f32.mrf.mxu3 }
 0x217   :  { %v1314_v0 = vpop.eup %1313  ;;  %v880_v60 = vadd.f32 %v840_v24, %v490_v55 }
 0x218   :  { %943 = vst [vmem:[#allocation2 + $0xd0] sm:$0xff] %v1314_v0 }
 0x219   :  { %1315 = vtanh.f32 %v880_v60  ;;  %v455_v3 = vpop.f32.mrf.mxu1 }
 0x21a   :  { %v492_v5 = vadd.f32 %v455_v3, %v102_v13 }
 0x21e   :  { %v843_v47 = vpop.f32.mrf.mxu3 }
 0x21f   :  { %v1316_v25 = vpop.eup %1315  ;;  %v881_v4 = vadd.f32 %v843_v47, %v491_v2 }
 0x220   :  { %944 = vst [vmem:[#allocation2 + $0xd8] sm:$0xff] %v1316_v25 }
 0x221   :  { %1317 = vtanh.f32 %v881_v4  ;;  %v458_v34 = vpop.f32.mrf.mxu1 }
 0x222   :  { %v493_v52 = vadd.f32 %v458_v34, %v103_v39 }
 0x226   :  { %v845_v6 = vpop.f32.mrf.mxu3 }
 0x227   :  { %v1318_v9 = vpop.eup %1317  ;;  %v882_v14 = vadd.f32 %v845_v6, %v492_v5 }
 0x228   :  { %945 = vst [vmem:[#allocation2 + $0xe0] sm:$0xff] %v1318_v9 }
 0x229   :  { %1319 = vtanh.f32 %v882_v14  ;;  %v460_v40 = vpop.f32.mrf.mxu1 }
 0x22a   :  { %v494_v35 = vadd.f32 %v460_v40, %v104_v16 }
 0x22e   :  { %v848_v15 = vpop.f32.mrf.mxu3 }
 0x22f   :  { %v1320_v7 = vpop.eup %1319  ;;  %v883_v28 = vadd.f32 %v848_v15, %v493_v52 }
 0x230   :  { %946 = vst [vmem:[#allocation2 + $0xe8] sm:$0xff] %v1320_v7 }
 0x231   :  { %1321 = vtanh.f32 %v883_v28 }
 0x236   :  { %v850_v57 = vpop.f32.mrf.mxu3 }
 0x237   :  { %v1322_v19 = vpop.eup %1321  ;;  %v884_v61 = vadd.f32 %v850_v57, %v494_v35 }
 0x238   :  { %947 = vst [vmem:[#allocation2 + $0xf0] sm:$0xff] %v1322_v19 }
 0x239   :  { %1323 = vtanh.f32 %v884_v61 }
 0x23f   :  { %v1324_v10 = vpop.eup %1323 }
 0x240   :  { %948 = vst [vmem:[#allocation2 + $0xf8] sm:$0xff] %v1324_v10 }
 0x241   :  { %961 = dma.vmem_to_hbm [thread:$0]  %s954_s26, 4096, %s956_s2, [#allocation3], %s1352_s29, %s1352_s29, %s1353_s30  }
 0x242   :  { %1349 = dma.done.wait [#allocation3], 4096  }
 0x243   :  { %1350 = vsyncadd [#allocation3], 4294963200 }
 0x244   :  { %966 = vsyncpa [#allocation3], 1 }

</bundles_post_ra>
